<compile_context>
chip_gen: v5e
topology: v5e:2x2
jax: 0.10.0
libtpu: 0.0.40
codegen_flags: <defaults>
</compile_context>

<pallas_src>
import jax
import jax.numpy as jnp
from jax.experimental import pallas as pl
from jax.experimental.pallas import tpu as pltpu


def _make_mask_spec_loss_kernel(gamma: float, scale_mag: float, scale_cplx: float,
                                rows: int, steps_per_core: int):
    """Kernel closure with the loss constants and row bookkeeping baked in."""
    half_g = 0.5 * float(gamma)          # |z|^g      = exp(half_g    * log|z|^2)
    half_gm1 = 0.5 * (float(gamma) - 1.0)  # |z|^g/|z| = exp(half_gm1 * log|z|^2)

    def kernel(mask_ref, erb_ref, noisy_ref, clean_ref, out_ref,
               acc_m_ref, acc_c_ref):
        c = pl.program_id(0)   # core group (parallel axis)
        i = pl.program_id(1)   # row-tile step within the group (reduction axis)
        tb, two_f = noisy_ref.shape

        @pl.when(i == 0)
        def _init():
            acc_m_ref[...] = jnp.zeros_like(acc_m_ref)
            acc_c_ref[...] = jnp.zeros_like(acc_c_ref)

        # ERB mask -> per-lane (interleaved re/im) mask on the MXU:
        # (tb, E) x (E, 2F) -> (tb, 2F).  erb_ref already has each frequency
        # column duplicated onto its re and im lanes.
        m_dup = jnp.dot(mask_ref[...].astype(jnp.float32), erb_ref[...],
                        preferred_element_type=jnp.float32)
        noisy = noisy_ref[...].astype(jnp.float32)   # lanes: [re0,im0,re1,im1,...]
        clean = clean_ref[...].astype(jnp.float32)
        enh = noisy * m_dup

        # Lane parity and row validity (ragged last tile / empty core chunk).
        lane = jax.lax.broadcasted_iota(jnp.int32, (tb, two_f), 1)
        is_re = (lane & 1) == 0
        row0 = (c * steps_per_core + i) * tb
        row = jax.lax.broadcasted_iota(jnp.int32, (tb, two_f), 0) + row0
        valid = row < rows

        # Per-lane |z|^2 of the owning frequency bin: square + partner lane,
        # partner fetched via XLU lane rotation (circular wrap lands only on
        # the discarded parity, so it is harmless).
        def abs2(z):
            sq = z * z
            nxt = pltpu.roll(sq, shift=two_f - 1, axis=1)   # sq[k+1]
            prv = pltpu.roll(sq, shift=1, axis=1)           # sq[k-1]
            return sq + jnp.where(is_re, nxt, prv)

        # clamp(|z|, 1e-12)^g == exp(half_g * log(max(|z|^2, 1e-24)));
        # the /|z| of the compressed-complex term folds into exp(half_gm1 * l).
        eps2 = jnp.float32(1e-24)
        e_l = jnp.log(jnp.maximum(abs2(enh), eps2))
        c_l = jnp.log(jnp.maximum(abs2(clean), eps2))
        e_cmp = jnp.exp(jnp.float32(half_g) * e_l)
        c_cmp = jnp.exp(jnp.float32(half_g) * c_l)
        e_scl = jnp.exp(jnp.float32(half_gm1) * e_l)
        c_scl = jnp.exp(jnp.float32(half_gm1) * c_l)

        # TODO(synk): for exactly-zero bins the torch reference uses angle(0)=0
        # (unit phase) while this gives 0; per-element difference ~2.5e-16.
        d_mag = e_cmp - c_cmp                    # duplicated per bin -> scale/2
        d_cpl = enh * e_scl - clean * c_scl      # view_as_real difference

        zero = jnp.float32(0.0)
        acc_m_ref[...] += jnp.sum(jnp.where(valid, d_mag * d_mag, zero),
                                  axis=0, keepdims=True)
        acc_c_ref[...] += jnp.sum(jnp.where(valid, d_cpl * d_cpl, zero),
                                  axis=0, keepdims=True)

        @pl.when(i == pl.num_programs(1) - 1)
        def _finalize():
            total = (jnp.sum(acc_m_ref[...]) * jnp.float32(scale_mag)
                     + jnp.sum(acc_c_ref[...]) * jnp.float32(scale_cplx))
            out_ref[...] = jnp.zeros_like(out_ref) + total

    return kernel


def mask_spec_loss(mask: jax.Array, clean: jax.Array, noisy: jax.Array,
                   erb_inv_fb: jax.Array, *, factor: float = 1.0,
                   gamma: float = 0.6, f_max_idx=None,
                   row_tile: int = 1024) -> jax.Array:
    """MaskSpecLoss.forward(input=mask, clean, noisy) -> scalar loss.

    mask:  (..., T, E)    predicted ERB mask
    clean: (..., T, F, 2) clean spec (real/imag last dim)
    noisy: (..., T, F, 2) noisy spec (real/imag last dim)
    erb_inv_fb: (E, F)    inverse ERB filterbank
    """
    n_erb = mask.shape[-1]
    n_freq = noisy.shape[-2]
    assert erb_inv_fb.shape == (n_erb, n_freq)
    assert clean.shape == noisy.shape and noisy.shape[-1] == 2
    assert mask.shape[:-1] == noisy.shape[:-2]

    erb = erb_inv_fb
    if f_max_idx is not None:
        # Frequency slice breaks contiguity -> this (non-default) path costs one copy.
        noisy = noisy[..., :f_max_idx, :]
        clean = clean[..., :f_max_idx, :]
        erb = erb[:, :f_max_idx]
        n_freq = int(f_max_idx)

    rows = 1
    for d in mask.shape[:-1]:
        rows *= d
    two_f = 2 * n_freq

    # Pure reshapes (contiguous trailing dims) -> no HBM copies, native dtype.
    mask2 = mask.reshape(rows, n_erb)
    noisy2 = noisy.reshape(rows, two_f)      # interleaved re/im lanes
    clean2 = clean.reshape(rows, two_f)
    # ERB fb with every frequency column duplicated onto its re/im lanes (tiny).
    erb_dup = jnp.repeat(erb.astype(jnp.float32), 2, axis=1)   # (E, 2F)

    spec_bytes = jnp.dtype(noisy2.dtype).itemsize
    mask_bytes = jnp.dtype(mask2.dtype).itemsize

    # Row tile: multiple of 8, as large as requested, shrunk to a conservative
    # double-buffered VMEM budget that fits v5e / v6e / v7x.
    tb = max(8, min(int(row_tile), (rows + 7) // 8 * 8) // 8 * 8)

    def footprint(t):
        return 2 * (t * n_erb * mask_bytes + 2 * t * two_f * spec_bytes
                    + n_erb * two_f * 4)

    budget = 36 << 20
    while tb > 8 and footprint(tb) > budget:
        tb = max(8, (tb // 2) // 8 * 8)
    vmem_limit = int(min(footprint(tb) + (8 << 20), 48 << 20))

    n_blocks = (rows + tb - 1) // tb
    num_groups = min(2, n_blocks)                 # v7x: 2 TensorCores
    spc = (n_blocks + num_groups - 1) // num_groups
    last_blk = n_blocks - 1

    n_bins = rows * n_freq
    kernel = _make_mask_spec_loss_kernel(
        gamma,
        float(factor) / (2.0 * n_bins),   # magnitude mean (bin counted twice)
        1.0 / (2.0 * n_bins),             # view_as_real MSE mean
        rows, spc)

    def row_map(c, i):
        return (jnp.minimum(c * spc + i, last_blk), 0)

    out = pl.pallas_call(
        kernel,
        out_shape=jax.ShapeDtypeStruct((1, 128 * num_groups), jnp.float32),
        grid_spec=pltpu.PrefetchScalarGridSpec(
            num_scalar_prefetch=0,
            grid=(num_groups, spc),
            in_specs=[
                pl.BlockSpec((tb, n_erb), row_map),
                pl.BlockSpec((n_erb, two_f), lambda c, i: (0, 0)),
                pl.BlockSpec((tb, two_f), row_map),
                pl.BlockSpec((tb, two_f), row_map),
            ],
            out_specs=pl.BlockSpec((1, 128), lambda c, i: (0, c)),
            scratch_shapes=[
                pltpu.VMEM((1, two_f), jnp.float32),  # magnitude per-lane sums
                pltpu.VMEM((1, two_f), jnp.float32),  # complex per-lane sums
            ],
        ),
        compiler_params=pltpu.CompilerParams(
            dimension_semantics=("parallel", "arbitrary"),
            vmem_limit_bytes=vmem_limit,
        ),
    )(mask2, erb_dup, noisy2, clean2)

    # One lane-dense 128-wide chunk per core group, each filled with its partial.
    return jnp.sum(out.reshape(num_groups, 128)[:, 0])


def _ref_mask_spec_loss(mask, clean, noisy, erb_inv_fb, factor=1.0, gamma=0.6,
                        f_max_idx=None):
    """Pure-JAX reference mirroring the PyTorch module (defaults: f_c=1, f_u=1)."""
    m_full = jnp.einsum("...e,ef->...f", mask.astype(jnp.float32),
                        erb_inv_fb.astype(jnp.float32))
    noisy_c = noisy[..., 0] + 1j * noisy[..., 1]
    clean_c = clean[..., 0] + 1j * clean[..., 1]
    enh = noisy_c * m_full
    if f_max_idx is not None:
        enh = enh[..., :f_max_idx]
        clean_c = clean_c[..., :f_max_idx]
    ia = jnp.abs(enh)
    ta = jnp.abs(clean_c)
    ia_c = jnp.maximum(ia, 1e-12) ** gamma
    ta_c = jnp.maximum(ta, 1e-12) ** gamma
    loss = jnp.mean((ia_c - ta_c) ** 2) * factor
    enh_cc = ia_c * jnp.exp(1j * jnp.angle(enh))
    cln_cc = ta_c * jnp.exp(1j * jnp.angle(clean_c))
    d = enh_cc - cln_cc
    loss_c = jnp.mean(jnp.stack([d.real, d.imag], axis=-1) ** 2)
    return loss + loss_c


if __name__ == "__main__":
    key = jax.random.PRNGKey(0)
    k1, k2, k3 = jax.random.split(key, 3)

    # Small DeepFilterNet-like shapes: batch=2, channels=1, time=17 (ragged
    # rows), freq bins F=128, ERB bands E=32.
    B, C, T, F, E = 2, 1, 17, 128, 32
    noisy = jax.random.normal(k1, (B, C, T, F, 2), dtype=jnp.float32)
    clean = jax.random.normal(k2, (B, C, T, F, 2), dtype=jnp.float32)
    mask = jax.random.uniform(k3, (B, C, T, E), dtype=jnp.float32)

    # Deterministic stand-in for erb_fb(df_state.erb_widths(), sr, inverse=True):
    # each ERB band maps with weight 1 onto F // E contiguous frequency bins.
    erb_inv_fb = jnp.repeat(jnp.eye(E, dtype=jnp.float32), F // E, axis=1)

    ref = _ref_mask_spec_loss(mask, clean, noisy, erb_inv_fb, factor=1.0, gamma=0.6)

    # Small row tile: multi-block grid, 2 core groups, ragged + clamped tiles.
    out_small = jax.block_until_ready(
        mask_spec_loss(mask, clean, noisy, erb_inv_fb, factor=1.0, gamma=0.6,
                       row_tile=8))
    assert out_small.shape == ()
    assert jnp.allclose(out_small, ref, atol=1e-4, rtol=1e-4), (out_small, ref)

    # Default (large) row tile: single block, single core group.
    out_big = jax.block_until_ready(
        mask_spec_loss(mask, clean, noisy, erb_inv_fb, factor=1.0, gamma=0.6))
    assert jnp.allclose(out_big, ref, atol=1e-4, rtol=1e-4), (out_big, ref)

    # f_max_idx path (2 * f_max_idx stays lane-aligned here).
    ref_fm = _ref_mask_spec_loss(mask, clean, noisy, erb_inv_fb, factor=1.0,
                                 gamma=0.6, f_max_idx=64)
    out_fm = jax.block_until_ready(
        mask_spec_loss(mask, clean, noisy, erb_inv_fb, factor=1.0, gamma=0.6,
                       f_max_idx=64, row_tile=16))
    assert jnp.allclose(out_fm, ref_fm, atol=1e-4, rtol=1e-4), (out_fm, ref_fm)

    print("KERNEL_OK")
</pallas_src>

<mosaic_0001>
module attributes {stable_mosaic.version = 11 : i64} {
  func.func @kernel(%arg0: i32, %arg1: i32, %arg2: memref<8x32xf32, #tpu.memory_space<vmem>>, %arg3: memref<32x256xf32, #tpu.memory_space<vmem>>, %arg4: memref<8x256xf32, #tpu.memory_space<vmem>>, %arg5: memref<8x256xf32, #tpu.memory_space<vmem>>, %arg6: memref<1x128xf32, #tpu.memory_space<vmem>>, %arg7: memref<1x256xf32, #tpu.memory_space<vmem>>, %arg8: memref<1x256xf32, #tpu.memory_space<vmem>>) attributes {dimension_semantics = [#tpu.dimension_semantics<parallel>, #tpu.dimension_semantics<arbitrary>], iteration_bounds = array<i64: 2, 3>, scalar_prefetch = 0 : i64, scratch_operands = 2 : i64, tpu.core_type = #tpu.core_type<tc>, window_params = [{transform_indices = @transform_0, window_bounds = array<i64: 8, 32>}, {pipeline_mode = #tpu.pipeline_mode<synchronous>, transform_indices = @transform_1, window_bounds = array<i64: 32, 256>}, {transform_indices = @transform_2, window_bounds = array<i64: 8, 256>}, {transform_indices = @transform_3, window_bounds = array<i64: 8, 256>}, {transform_indices = @transform_4, window_bounds = array<i64: 1, 128>}]} {
    %c0_i32 = arith.constant 0 : i32
    %0 = arith.cmpi eq, %arg1, %c0_i32 : i32
    %1 = arith.extui %0 : i1 to i32
    %c0_i32_0 = arith.constant 0 : i32
    %2 = arith.cmpi ne, %1, %c0_i32_0 : i32
    scf.if %2 {
      %cst_31 = arith.constant 0.000000e+00 : f32
      %73 = vector.broadcast %cst_31 : f32 to vector<1x256xf32>
      %c0_32 = arith.constant 0 : index
      %c0_33 = arith.constant 0 : index
      %74 = vector.load %arg7[%c0_32, %c0_33] : memref<1x256xf32, #tpu.memory_space<vmem>>, vector<1x256xf32>
      tpu.vector_store %arg7[%c0_32, %c0_33], %73 {strides = array<i32>} : memref<1x256xf32, #tpu.memory_space<vmem>>, vector<1x256xf32>,
      %cst_34 = arith.constant 0.000000e+00 : f32
      %75 = vector.broadcast %cst_34 : f32 to vector<1x256xf32>
      %c0_35 = arith.constant 0 : index
      %c0_36 = arith.constant 0 : index
      %76 = vector.load %arg8[%c0_35, %c0_36] : memref<1x256xf32, #tpu.memory_space<vmem>>, vector<1x256xf32>
      tpu.vector_store %arg8[%c0_35, %c0_36], %75 {strides = array<i32>} : memref<1x256xf32, #tpu.memory_space<vmem>>, vector<1x256xf32>,
    } else {
    }
    %c0 = arith.constant 0 : index
    %c0_1 = arith.constant 0 : index
    %3 = vector.load %arg2[%c0, %c0_1] : memref<8x32xf32, #tpu.memory_space<vmem>>, vector<8x32xf32>
    %c0_2 = arith.constant 0 : index
    %c0_3 = arith.constant 0 : index
    %4 = vector.load %arg3[%c0_2, %c0_3] : memref<32x256xf32, #tpu.memory_space<vmem>>, vector<32x256xf32>
    %cst = arith.constant dense<0.000000e+00> : vector<8x256xf32>
    %5 = tpu.matmul %3, %4, %cst {dimension_numbers = #tpu.dot_dimension_numbers<[1], [0], [0], [1], [0, 0, 1, 1], [], []>} : vector<8x32xf32>, vector<32x256xf32>, vector<8x256xf32> -> vector<8x256xf32>
    %c0_4 = arith.constant 0 : index
    %c0_5 = arith.constant 0 : index
    %6 = vector.load %arg4[%c0_4, %c0_5] : memref<8x256xf32, #tpu.memory_space<vmem>>, vector<8x256xf32>
    %c0_6 = arith.constant 0 : index
    %c0_7 = arith.constant 0 : index
    %7 = vector.load %arg5[%c0_6, %c0_7] : memref<8x256xf32, #tpu.memory_space<vmem>>, vector<8x256xf32>
    %8 = arith.mulf %6, %5 : vector<8x256xf32>
    %9 = tpu.iota {dimensions = array<i32: 1>} : vector<8x256xi32>
    %c1_i32 = arith.constant 1 : i32
    %10 = vector.broadcast %c1_i32 : i32 to vector<8x256xi32>
    %11 = arith.andi %9, %10 : vector<8x256xi32>
    %c0_i32_8 = arith.constant 0 : i32
    %12 = vector.broadcast %c0_i32_8 : i32 to vector<8x256xi32>
    %13 = arith.cmpi eq, %11, %12 : vector<8x256xi32>
    %c3_i32 = arith.constant 3 : i32
    %14 = arith.muli %arg0, %c3_i32 : i32
    %15 = arith.addi %14, %arg1 : i32
    %c8_i32 = arith.constant 8 : i32
    %16 = arith.muli %15, %c8_i32 : i32
    %17 = tpu.iota {dimensions = array<i32: 0>} : vector<8x256xi32>
    %18 = vector.broadcast %16 : i32 to vector<8x256xi32>
    %19 = arith.addi %17, %18 : vector<8x256xi32>
    %c34_i32 = arith.constant 34 : i32
    %20 = vector.broadcast %c34_i32 : i32 to vector<8x256xi32>
    %21 = arith.cmpi slt, %19, %20 : vector<8x256xi32>
    %22 = arith.mulf %8, %8 : vector<8x256xf32>
    %c255_i32 = arith.constant 255 : i32
    %23 = tpu.dynamic_rotate %22 by %c255_i32 dim 1 : vector<8x256xf32>, i32 -> vector<8x256xf32>
    %c1_i32_9 = arith.constant 1 : i32
    %24 = tpu.dynamic_rotate %22 by %c1_i32_9 dim 1 : vector<8x256xf32>, i32 -> vector<8x256xf32>
    %25 = arith.select %13, %23, %24 : vector<8x256xi1>, vector<8x256xf32>
    %26 = arith.addf %22, %25 : vector<8x256xf32>
    %cst_10 = arith.constant 1.000000e-24 : f32
    %27 = vector.broadcast %cst_10 : f32 to vector<8x256xf32>
    %28 = arith.maximumf %26, %27 : vector<8x256xf32>
    %29 = math.log %28 : vector<8x256xf32>
    %30 = arith.mulf %7, %7 : vector<8x256xf32>
    %c255_i32_11 = arith.constant 255 : i32
    %31 = tpu.dynamic_rotate %30 by %c255_i32_11 dim 1 : vector<8x256xf32>, i32 -> vector<8x256xf32>
    %c1_i32_12 = arith.constant 1 : i32
    %32 = tpu.dynamic_rotate %30 by %c1_i32_12 dim 1 : vector<8x256xf32>, i32 -> vector<8x256xf32>
    %33 = arith.select %13, %31, %32 : vector<8x256xi1>, vector<8x256xf32>
    %34 = arith.addf %30, %33 : vector<8x256xf32>
    %cst_13 = arith.constant 1.000000e-24 : f32
    %35 = vector.broadcast %cst_13 : f32 to vector<8x256xf32>
    %36 = arith.maximumf %34, %35 : vector<8x256xf32>
    %37 = math.log %36 : vector<8x256xf32>
    %cst_14 = arith.constant 3.000000e-01 : f32
    %38 = vector.broadcast %cst_14 : f32 to vector<8x256xf32>
    %39 = arith.mulf %38, %29 : vector<8x256xf32>
    %40 = math.exp %39 : vector<8x256xf32>
    %cst_15 = arith.constant 3.000000e-01 : f32
    %41 = vector.broadcast %cst_15 : f32 to vector<8x256xf32>
    %42 = arith.mulf %41, %37 : vector<8x256xf32>
    %43 = math.exp %42 : vector<8x256xf32>
    %cst_16 = arith.constant -2.000000e-01 : f32
    %44 = vector.broadcast %cst_16 : f32 to vector<8x256xf32>
    %45 = arith.mulf %44, %29 : vector<8x256xf32>
    %46 = math.exp %45 : vector<8x256xf32>
    %cst_17 = arith.constant -2.000000e-01 : f32
    %47 = vector.broadcast %cst_17 : f32 to vector<8x256xf32>
    %48 = arith.mulf %47, %37 : vector<8x256xf32>
    %49 = math.exp %48 : vector<8x256xf32>
    %50 = arith.subf %40, %43 : vector<8x256xf32>
    %51 = arith.mulf %8, %46 : vector<8x256xf32>
    %52 = arith.mulf %7, %49 : vector<8x256xf32>
    %53 = arith.subf %51, %52 : vector<8x256xf32>
    %c0_18 = arith.constant 0 : index
    %c0_19 = arith.constant 0 : index
    %54 = vector.load %arg7[%c0_18, %c0_19] : memref<1x256xf32, #tpu.memory_space<vmem>>, vector<1x256xf32>
    %55 = arith.mulf %50, %50 : vector<8x256xf32>
    %cst_20 = arith.constant 0.000000e+00 : f32
    %56 = vector.broadcast %cst_20 : f32 to vector<8x256xf32>
    %57 = arith.select %21, %55, %56 : vector<8x256xi1>, vector<8x256xf32>
    %cst_21 = arith.constant dense<0.000000e+00> : vector<256xf32>
    %58 = vector.multi_reduction <add>, %57, %cst_21 [0] : vector<8x256xf32> to vector<256xf32>
    %59 = vector.shape_cast %58 : vector<256xf32> to vector<1x256xf32>
    %60 = arith.addf %54, %59 : vector<1x256xf32>
    %c0_22 = arith.constant 0 : index
    %c0_23 = arith.constant 0 : index
    %61 = vector.load %arg7[%c0_22, %c0_23] : memref<1x256xf32, #tpu.memory_space<vmem>>, vector<1x256xf32>
    tpu.vector_store %arg7[%c0_22, %c0_23], %60 {strides = array<i32>} : memref<1x256xf32, #tpu.memory_space<vmem>>, vector<1x256xf32>,
    %c0_24 = arith.constant 0 : index
    %c0_25 = arith.constant 0 : index
    %62 = vector.load %arg8[%c0_24, %c0_25] : memref<1x256xf32, #tpu.memory_space<vmem>>, vector<1x256xf32>
    %63 = arith.mulf %53, %53 : vector<8x256xf32>
    %cst_26 = arith.constant 0.000000e+00 : f32
    %64 = vector.broadcast %cst_26 : f32 to vector<8x256xf32>
    %65 = arith.select %21, %63, %64 : vector<8x256xi1>, vector<8x256xf32>
    %cst_27 = arith.constant dense<0.000000e+00> : vector<256xf32>
    %66 = vector.multi_reduction <add>, %65, %cst_27 [0] : vector<8x256xf32> to vector<256xf32>
    %67 = vector.shape_cast %66 : vector<256xf32> to vector<1x256xf32>
    %68 = arith.addf %62, %67 : vector<1x256xf32>
    %c0_28 = arith.constant 0 : index
    %c0_29 = arith.constant 0 : index
    %69 = vector.load %arg8[%c0_28, %c0_29] : memref<1x256xf32, #tpu.memory_space<vmem>>, vector<1x256xf32>
    tpu.vector_store %arg8[%c0_28, %c0_29], %68 {strides = array<i32>} : memref<1x256xf32, #tpu.memory_space<vmem>>, vector<1x256xf32>,
    %c2_i32 = arith.constant 2 : i32
    %70 = arith.cmpi eq, %arg1, %c2_i32 : i32
    %71 = arith.extui %70 : i1 to i32
    %c0_i32_30 = arith.constant 0 : i32
    %72 = arith.cmpi ne, %71, %c0_i32_30 : i32
    scf.if %72 {
      %c0_31 = arith.constant 0 : index
      %c0_32 = arith.constant 0 : index
      %73 = vector.load %arg7[%c0_31, %c0_32] : memref<1x256xf32, #tpu.memory_space<vmem>>, vector<1x256xf32>
      %74 = vector.shape_cast %73 : vector<1x256xf32> to vector<1x1x256xf32>
      %cst_33 = arith.constant dense<0.000000e+00> : vector<1xf32>
      %75 = vector.multi_reduction <add>, %74, %cst_33 [1, 2] : vector<1x1x256xf32> to vector<1xf32>
      %76 = vector.shape_cast %75 : vector<1xf32> to vector<1x1x1xf32>
      %77 = vector.extract %76[0, 0, 0] : f32 from vector<1x1x1xf32>
      %cst_34 = arith.constant 1.14889706E-4 : f32
      %78 = arith.mulf %77, %cst_34 : f32
      %c0_35 = arith.constant 0 : index
      %c0_36 = arith.constant 0 : index
      %79 = vector.load %arg8[%c0_35, %c0_36] : memref<1x256xf32, #tpu.memory_space<vmem>>, vector<1x256xf32>
      %80 = vector.shape_cast %79 : vector<1x256xf32> to vector<1x1x256xf32>
      %cst_37 = arith.constant dense<0.000000e+00> : vector<1xf32>
      %81 = vector.multi_reduction <add>, %80, %cst_37 [1, 2] : vector<1x1x256xf32> to vector<1xf32>
      %82 = vector.shape_cast %81 : vector<1xf32> to vector<1x1x1xf32>
      %83 = vector.extract %82[0, 0, 0] : f32 from vector<1x1x1xf32>
      %cst_38 = arith.constant 1.14889706E-4 : f32
      %84 = arith.mulf %83, %cst_38 : f32
      %85 = arith.addf %78, %84 : f32
      %cst_39 = arith.constant 0.000000e+00 : f32
      %86 = vector.broadcast %cst_39 : f32 to vector<1x128xf32>
      %87 = vector.broadcast %85 : f32 to vector<1x128xf32>
      %88 = arith.addf %86, %87 : vector<1x128xf32>
      %c0_40 = arith.constant 0 : index
      %c0_41 = arith.constant 0 : index
      %89 = vector.load %arg6[%c0_40, %c0_41] : memref<1x128xf32, #tpu.memory_space<vmem>>, vector<1x128xf32>
      tpu.vector_store %arg6[%c0_40, %c0_41], %88 {strides = array<i32>} : memref<1x128xf32, #tpu.memory_space<vmem>>, vector<1x128xf32>,
    } else {
    }
    return
  }
  func.func @transform_0(%arg0: i32, %arg1: i32) -> (i32, i32) {
    %c3_i32 = arith.constant 3 : i32
    %0 = arith.muli %arg0, %c3_i32 : i32
    %1 = arith.addi %0, %arg1 : i32
    %c4_i32 = arith.constant 4 : i32
    %2 = arith.minsi %1, %c4_i32 : i32
    %c0_i32 = arith.constant 0 : i32
    %c0_i32_0 = arith.constant 0 : i32
    return %2, %c0_i32 : i32, i32
  }
  func.func @transform_1(%arg0: i32, %arg1: i32) -> (i32, i32) {
    %c0_i32 = arith.constant 0 : i32
    %c0_i32_0 = arith.constant 0 : i32
    %c0_i32_1 = arith.constant 0 : i32
    return %c0_i32, %c0_i32_0 : i32, i32
  }
  func.func @transform_2(%arg0: i32, %arg1: i32) -> (i32, i32) {
    %c3_i32 = arith.constant 3 : i32
    %0 = arith.muli %arg0, %c3_i32 : i32
    %1 = arith.addi %0, %arg1 : i32
    %c4_i32 = arith.constant 4 : i32
    %2 = arith.minsi %1, %c4_i32 : i32
    %c0_i32 = arith.constant 0 : i32
    %c0_i32_0 = arith.constant 0 : i32
    return %2, %c0_i32 : i32, i32
  }
  func.func @transform_3(%arg0: i32, %arg1: i32) -> (i32, i32) {
    %c3_i32 = arith.constant 3 : i32
    %0 = arith.muli %arg0, %c3_i32 : i32
    %1 = arith.addi %0, %arg1 : i32
    %c4_i32 = arith.constant 4 : i32
    %2 = arith.minsi %1, %c4_i32 : i32
    %c0_i32 = arith.constant 0 : i32
    %c0_i32_0 = arith.constant 0 : i32
    return %2, %c0_i32 : i32, i32
  }
  func.func @transform_4(%arg0: i32, %arg1: i32) -> (i32, i32) {
    %c0_i32 = arith.constant 0 : i32
    %c0_i32_0 = arith.constant 0 : i32
    return %c0_i32, %arg0 : i32, i32
  }
}

</mosaic_0001>

<bundles_post_ra>
// kernel: tpu_custom_call.1
= control target key start
LH: loop header
LB: loop body
LE: loop exit
PB: predicated region body
PF: predicated region fallthrough
CT: control target
= control target key end

     0   :  { %s1407_s0 = inlined_call_operand.vmem [shape: f32[34,32], index: 0, kind: input, shape index: {}]   ;;  %s1408_s1 = inlined_call_operand.vmem [shape: f32[32,256], index: 1, kind: input, shape index: {}]   ;;  %s1409_s2 = inlined_call_operand.hbm [shape: f32[34,256], index: 2, kind: input, shape index: {}]   ;;  %s1410_s3 = inlined_call_operand.hbm [shape: f32[34,256], index: 3, kind: input, shape index: {}]   ;;  %s1411_s4 = inlined_call_operand.hbm [shape: f32[1,256], index: 4, kind: output, shape index: {}]  }
   0x1   :  { %1417 = sst [smem:[#allocation20_spill]] %s1409_s2 }
   0x2   :  { %9 = vsyncpa [#allocation5], 0 }
   0x3   :  { %11 = vsyncpa [#allocation5 + $0x1], 0 }
   0x4   :  { %12 = vsyncpa [#allocation8], 0 }
   0x5   :  { %14 = vsyncpa [#allocation8 + $0x1], 0 }
   0x6   :  { %15 = vsyncpa [#allocation6], 0 }
   0x7   :  { %17 = vsyncpa [#allocation6 + $0x1], 0  ;;  %s1114_s15 = smov 0   ;;  %s1116_s16 = smov 0  }
   0x8   :  { %s1118_s17 = smov 0   ;;  %s1120_s18 = smov 0  }
   0x9   :  { %s1122_s19 = smov 0   ;;  %s1124_s20 = smov 0  }
   0xa   :  { %s1126_s21 = smov 0   ;;  %s1128_s22 = smov 0  }
   0xb   :  { %s1130_s23 = smov 0   ;;  %s1132_s24 = smov 0  }
   0xc   :  { %s1134_s25 = smov 0  }
   0xd LB: > { %1418 = sst [smem:[#allocation13_spill]] %s1064_s20  ;;  %s734_s26 = sadd.s32 4294967295, %s1084_s25   ;;  %s1084_s25 = sphi %s1134_s25, %s23_s25   ;;  %s1080_s24 = sphi %s1132_s24, %s1440_s24   ;;  %s1076_s23 = sphi %s1130_s23, %s1439_s23   ;;  %s1072_s22 = sphi %s1128_s22, %s1438_s22   ;;  %s1068_s21 = sphi %s1126_s21, %s1437_s21   ;;  %s1064_s20 = sphi %s1124_s20, %s1436_s20   ;;  %s1060_s19 = sphi %s1122_s19, %s1445_s19   ;;  %s1056_s18 = sphi %s1120_s18, %s1444_s18   ;;  %s1052_s17 = sphi %s1118_s17, %s1443_s17   ;;  %s1048_s16 = sphi %s1116_s16, %s1442_s16   ;;  %s1044_s15 = sphi %s1114_s15, %s1441_s15  }
   0xe   : > { %1419 = sst [smem:[#allocation14_spill]] %s1076_s23  ;;  %s735_s27 = sadd.s32 4294967294, %s1084_s25  }
   0xf   : > { %1420 = sst [smem:[#allocation15_spill]] %s1080_s24  ;;  %s32_s28 = sadd.s32 1, %s1076_s23 }
  0x10   : > { %s35_s29 = sadd.s32 1, %s1080_s24  ;;  %p33_p0 = scmp.ge.s32.totalorder %s32_s28, 3 }
  0x11   : > { %s94_s30 = smul.u32 3, %s1080_s24  ;;  %s105_s5 = sadd.s32 1, %s1064_s20 }
  0x12   : > { %p112_p1 = scmp.ne.s32.totalorder %s1064_s20, %s1060_s19  ;;  %s1447_s28 = smov (%p33_p0, %s32_s28), 0 }
  0x13   : > { %1421 = sst [smem:[#allocation16_spill]] %s1447_s28  ;;  %s1449_s29 = smov (!%p33_p0, %s35_s29), %s1080_s24 }
  0x14   : > { %s95_s6 = sadd.s32 %s1076_s23, %s94_s30  ;;  %p113_p2 = scmp.eq.s32.totalorder %s1084_s25, 0 }
  0x15   : > { %p37_p3 = scmp.ge.s32.totalorder %s1449_s29, 2  ;;  %p96_p4 = scmp.lt.s32.totalorder %s95_s6, 4 }
  0x16   : > { %p1182_p5 = por %p113_p2, %p112_p1  ;;  %p118_p6 = scmp.ne.s32.totalorder %s1060_s19, %s1056_s18 }
  0x17   : > { %s1451_s29 = smov (%p37_p3, %s1449_s29), 0  ;;  %s1453_s6 = smov (!%p96_p4, %s95_s6), 4 }
  0x18   : > { %1423 = sst [smem:[#allocation17_spill]] %s1451_s29  ;;  %s98_s8 = smul.u32 3, %s1451_s29 }
  0x19   : > { %p119_p7 = scmp.eq.s32.totalorder %s734_s26, 0  ;;  %s162_s9 = ssub.s32 %s1080_s24, %s1451_s29 }
  0x1a   : > { %s165_s10 = sadd.s32 1, %s1052_s17  ;;  %s99_s11 = sadd.s32 %s98_s8, %s1447_s28 }
  0x1b   : > { %p1197_p8 = por %p119_p7, %p118_p6  ;;  %p100_p9 = scmp.lt.s32.totalorder %s99_s11, 4 }
  0x1c   : > { %p163_p10 = scmp.eq.s32.totalorder %s162_s9, 0  ;;  %p175_p11 = scmp.ne.s32.totalorder %s1052_s17, %s1048_s16 }
  0x1d   : > { %p176_p12 = scmp.eq.s32.totalorder %s734_s26, 5  ;;  %s1455_s11 = smov (!%p100_p9, %s99_s11), 4 }
  0x1e   : > { %s1204_s13 = scalar_select %p163_p10, %s1052_s17, %s165_s10  }
  0x1f   : > { %s102_s14 = ssub.s32 %s1453_s6, %s1455_s11  ;;  %p1207_p13 = por %p176_p12, %p175_p11 }
  0x20   : > { %1425 = sst [smem:[#allocation18_spill]] %s1204_s13  ;;  %p103_p0 = scmp.eq.s32.totalorder %s102_s14, 0 }
  0x21   : > { %p181_p1 = scmp.ne.s32.totalorder %s1048_s16, %s1044_s15  ;;  %p182_p2 = scmp.eq.s32.totalorder %s735_s27, 5 }
  0x22   : > { %s1218_s30 = scalar_select %p103_p0, %s1064_s20, %s105_s5  }
  0x23   : > { %p1220_p3 = por %p182_p2, %p181_p1  ;;  %p781_p4 = scmp.lt.s32.totalorder %s1084_s25, 6 }
  0x24   : > { %1427 = sst [smem:[#allocation19_spill]] %s1218_s30  ;;  %s220_s8 = sand.u32 1, %s1064_s20  }
  0x25   : > { %s758_s9 = sshll.u32 %s1453_s6, 4  ;;  %s738_s10 = sshll.u32 %s220_s8, 4 }
  0x26   : > { %s1429_s2 = sld [smem:[#allocation20_spill]]  ;;  %s224_s24 = scalar_lea.vmem [#allocation4], %s738_s10 }
  0x27   : > { %s237_s23 = sshll.u32 %s224_s24, 4  ;;  %p771_p6 = pnand %p781_p4, %p1182_p5  ;;  %s238_s23 = int_to_ptr.vmem [resolvable:$true] %s237_s23 }
  0x28   : > { %p744_p7 = scmp.ge.s32.totalorder %s1084_s25, 1  ;;  %p266_p9 = scmp.lt.s32.totalorder %s1084_s25, 7 }
  0x29   : > { %s221_s27 = scalar_lea.sflag [#allocation5], %s220_s8  ;;  %s257_s6 = scalar_lea.hbm %s1410_s3, %s758_s9 }
  0x2a   : > { %p267_p10 = pnand %p744_p7, %p266_p9  ;;  %s259_s20 = sshll.u32 %s257_s6, 4  ;;  %s260_s20 = int_to_ptr.hbm [resolvable:$true] %s259_s20 }
  0x2b   : > { %s248_s13 = scalar_lea.vmem [#allocation7], %s738_s10  ;;  %s245_s11 = scalar_lea.sflag [#allocation8], %s220_s8 }
  0x2c   : > { %s233_s14 = scalar_lea.hbm %s1429_s2, %s758_s9  ;;  %s261_s29 = sshll.u32 %s248_s13, 4  ;;  %s262_s29 = int_to_ptr.vmem [resolvable:$true] %s261_s29 }
  0x2d   : > { %s235_s28 = sshll.u32 %s233_s14, 4  ;;  %270 = sbr.rel (%p267_p10) target bundleno = 607 (0x25f), region = 36  ;;  %s236_s28 = int_to_ptr.hbm [resolvable:$true] %s235_s28 }
  0x2e   : > { %773 = dma.hbm_to_vmem [thread:$0]  (!%p771_p6), %s236_s28, 256, %s238_s23, %s221_s27  }
  0x2f   : > { %776 = dma.hbm_to_vmem [thread:$0]  (!%p771_p6), %s260_s20, 256, %s262_s29, %s245_s11  }
  0x30   : > { %s272_s24 = sand.u32 (!%p267_p10), 1, %s1060_s19  }
  0x31   : > { %s745_s7 = sshll.u32 (!%p267_p10), %s272_s24, 4  ;;  %s273_s14 = scalar_lea.sflag (!%p267_p10), [#allocation5], %s272_s24 }
  0x32   : > { %s1238_s2 = scalar_lea.vmem [#allocation4], %s745_s7 }
  0x33   : > { %1031 = dma.done.wait (%p1197_p8), %s273_s14, 256  }
  0x34   : > { %1033 = vsyncadd (%p1197_p8), %s273_s14, 4294967040  ;;  %s283_s23 = scalar_lea.sflag [#allocation8], %s272_s24  ;;  %s1244_s28 = scalar_lea.vmem [#allocation7], %s745_s7 }
  0x35   : > { %1035 = dma.done.wait (%p1197_p8), %s283_s23, 256  }
  0x36   : > { %1037 = vsyncadd (%p1197_p8), %s283_s23, 4294967040  ;;  %s322_s20 = sand.u32 1, %s1048_s16   ;;  %s324_s13 = smul.u32 3, %s1072_s22 }
  0x37   : > { %s1262_s12 = scalar_lea.vmem [#allocation9], %s322_s20  ;;  %p751_p8 = scmp.ne.s32.totalorder %s1068_s21, 0 }
  0x38   : > { %s1253_s30 = sadd.s32 %s1068_s21, %s324_s13 }
  0x39   : > { %p326_p5 = scmp.lt.s32.totalorder %s1253_s30, 4 }
  0x3b   : > { %s327_s8 = scalar_select %p326_p5, %s1253_s30, 4 }
  0x3c   : > { %347 = sbr.rel (%p751_p8) target bundleno = 70 (0x46), region = 48 }
  0x3d   : > { %s1457_s8 = smov (!%p326_p5, %s327_s8), 4 }
  0x3e   : > { %s750_s9 = sshll.u32 %s1457_s8, 3 }
  0x3f   : > { %s331_s5 = scalar_lea.vmem %s1407_s0, %s750_s9 }
  0x41   : > { %v348_v0 = vlaneseq  ;;  %v1086_v1 = vmov 0.0  }
  0x43   : > { %vm350_vm0 = vcmp.lt.s32.totalorder %v348_v0, 256 }
  0x44   : > { %352 = vst.msk [vmem:[#allocation2] sm:$0x3] %vm350_vm0, %v1086_v1 }
  0x45   : > { %353 = vst.msk [vmem:[#allocation3] sm:$0x3] %vm350_vm0, %v1086_v1 }
  0x46 PF: > { %v361_v2 = vld [vmem:[%s1408_s1 + $0x30] sm:$0xff]  ;;  %v359_v3 = vld [vmem:[%s1408_s1 + $0x20] sm:$0xff]  ;;  %v362_v4 = vld [vmem:[%s1408_s1 + $0x38] sm:$0xff]  ;;  %vm363_vm1 = vcmask 261120   ;;  %s1087_s7 = smov 127   ;;  %v413_v23 = vlaneseq  ;;  %vm530_vm7 = vcmask 1040384  }
  0x47   : > { %379 = vmatpush.msra.mxu0 %v361_v2  ;;  %v357_v5 = vld [vmem:[%s1408_s1 + $0x10] sm:$0xff]  ;;  %399 = vmatpush.msra.mxu1 %v362_v4  ;;  %v360_v6 = vld [vmem:[%s1408_s1 + $0x28] sm:$0xff]  ;;  %v358_v7 = vld [vmem:[%s1408_s1 + $0x18] sm:$0xff]  ;;  %p755_p11 = scmp.ne.s32.totalorder %s1068_s21, 2 }
  0x48   : > { %v355_v8 = vld [vmem:[%s1408_s1] sm:$0xff]  ;;  %v356_v10 = vld [vmem:[%s1408_s1 + $0x8] sm:$0xff]  ;;  %v414_v24 = vand.u32 127, %v413_v23  ;;  %vm536_vm8 = vcmp.lt.s32.totalorder %v413_v23, 256 }
  0x49   : > { %380 = vmatpush.msra.mxu0 %v359_v3  ;;  %400 = vmatpush.msra.mxu1 %v360_v6  ;;  %v354_v9 = vld [vmem:[%s331_s5] sm:$0xff]  ;;  %s1088_s5 = smov 1  }
  0x4a   : > { %v1290_v11 = vld [vmem:[%s1244_s28] sm:$0xff]  ;;  %v1295_v13 = vld [vmem:[%s1244_s28 + $0x8] sm:$0xff]  ;;  %v415_v25 = vadd.s32 128, %v414_v24  ;;  %v416_v28 = vand.u32 1, %v414_v24  ;;  %vm434_vm2 = vcmp.lt.s32.totalorder %v414_v24, 127  ;;  %vm441_vm3 = vcmp.lt.s32.totalorder %v414_v24, 1 }
  0x4b   : > { %381 = vmatpush.msra.mxu0 %v357_v5  ;;  %401 = vmatpush.msra.mxu1 %v358_v7  ;;  %v454_v12 = vmul.f32 %v1290_v11, %v1290_v11  ;;  %v455_v14 = vmul.f32 %v1295_v13, %v1295_v13  ;;  %v407_v15 = vld [vmem:[%s1238_s2] sm:$0xff]  ;;  %v408_v19 = vld [vmem:[%s1238_s2 + $0x8] sm:$0xff]  ;;  %s754_s2 = sshll.u32 %s1253_s30, 3 }
  0x4c   : > { %v417_v29 = vand.u32 1, %v415_v25  ;;  %vm1310_vm4 = vcmp.eq.s32.totalorder %v416_v28, 0  ;;  %v425_v24 = vstv %s754_s2 }
  0x4d   : > { %382 = vmatpush.msra.mxu0 %v355_v8  ;;  %402 = vmatpush.msra.mxu1 %v356_v10 }
  0x4e   : > { %752 = vmatmul.msk.f32.vlgmr.msra.gmra.mxu0 %vm363_vm1, %v354_v9  ;;  %753 = vmatmul.msk.f32.vlgmr.msra.gmra.mxu1 %vm363_vm1, %v354_v9  ;;  %vm1314_vm5 = vcmp.eq.s32.totalorder %v417_v29, 0 }
  0x4f   : > { %456 = vrot.lane.b32.xlu2 %v454_v12, %s1087_s7 }
  0x57   : > { %458 = vrot.lane.b32.xlu2 %v455_v14, %s1087_s7 }
  0xa9   : > { %v457_v30 = vpop.permute.xlu2 %456 }
  0xb1   : > { %v459_v45 = vpop.permute.xlu2 %458 }
  0xb2   : > { %v460_v48 = vsel %vm434_vm2, %v457_v30, %v459_v45  ;;  %v461_v49 = vsel %vm434_vm2, %v459_v45, %v457_v30 }
  0xcb   : > { %v384_v16 = vpop.f32.mrf.mxu0  ;;  %v404_v18 = vpop.f32.mrf.mxu1 }
  0xcc   : > { %v1300_v17 = vmul.f32 %v407_v15, %v384_v16  ;;  %v1305_v21 = vmul.f32 %v408_v19, %v404_v18 }
  0xce   : > { %v428_v20 = vmul.f32 %v1300_v17, %v1300_v17  ;;  %v429_v22 = vmul.f32 %v1305_v21, %v1305_v21 }
  0xd0   : > { %437 = vrot.lane.b32.xlu1 %v428_v20, %s1088_s5  ;;  %430 = vrot.lane.b32.xlu0 %v428_v20, %s1087_s7 }
  0xd8   : > { %439 = vrot.lane.b32.xlu1 %v429_v22, %s1088_s5  ;;  %432 = vrot.lane.b32.xlu0 %v429_v22, %s1087_s7 }
  0xe0   : > { %464 = vrot.lane.b32.xlu1 %v455_v14, %s1088_s5  ;;  %462 = vrot.lane.b32.xlu0 %v454_v12, %s1088_s5 }
 0x142   : > { %v438_v26 = vpop.permute.xlu1 %437  ;;  %v431_v27 = vpop.permute.xlu0 %430 }
 0x14a   : > { %v440_v33 = vpop.permute.xlu1 %439  ;;  %v433_v34 = vpop.permute.xlu0 %432 }
 0x14b   : > { %v442_v35 = vsel %vm441_vm3, %v438_v26, %v440_v33  ;;  %v443_v36 = vsel %vm441_vm3, %v440_v33, %v438_v26  ;;  %v435_v37 = vsel %vm434_vm2, %v431_v27, %v433_v34  ;;  %v436_v38 = vsel %vm434_vm2, %v433_v34, %v431_v27 }
 0x14c   : > { %v444_v39 = vsel %vm1310_vm4, %v435_v37, %v443_v36  ;;  %v445_v40 = vsel %vm1314_vm5, %v436_v38, %v442_v35 }
 0x14d   : > { %v446_v41 = vadd.f32 %v444_v39, %v428_v20  ;;  %v447_v42 = vadd.f32 %v445_v40, %v429_v22  ;;  %v424_v22 = vshrl.u32 %v413_v23, 7 }
 0x14f   : > { %v448_v43 = vmax.f32 %v446_v41, 1e-24  ;;  %v449_v44 = vmax.f32 %v447_v42, 1e-24  ;;  %v426_v28 = vadd.s32 %v425_v24, %v424_v22 }
 0x151   : > { %874 = vlog2.f32 %v448_v43  ;;  %vm427_vm6 = vcmp.lt.s32.totalorder %v426_v28, 34 }
 0x152   : > { %876 = vlog2.f32 %v449_v44  ;;  %v465_v46 = vpop.permute.xlu1 %464  ;;  %v463_v47 = vpop.permute.xlu0 %462 }
 0x153   : > { %v466_v50 = vsel %vm441_vm3, %v463_v47, %v465_v46  ;;  %v467_v51 = vsel %vm441_vm3, %v465_v46, %v463_v47 }
 0x154   : > { %v468_v52 = vsel %vm1310_vm4, %v460_v48, %v467_v51  ;;  %v469_v53 = vsel %vm1314_vm5, %v461_v49, %v466_v50 }
 0x155   : > { %v470_v54 = vadd.f32 %v468_v52, %v454_v12  ;;  %v471_v55 = vadd.f32 %v469_v53, %v455_v14 }
 0x157   : > { %v875_v56 = vpop.eup %874  ;;  %v472_v57 = vmax.f32 %v470_v54, 1e-24  ;;  %v473_v58 = vmax.f32 %v471_v55, 1e-24 }
 0x158   : > { %v877_v59 = vpop.eup %876  ;;  %v451_v60 = vmul.f32 0.6931472, %v875_v56 }
 0x159   : > { %v453_v61 = vmul.f32 0.6931472, %v877_v59  ;;  %878 = vlog2.f32 %v472_v57 }
 0x15a   : > { %v478_v62 = vmul.f32 0.3, %v451_v60  ;;  %880 = vlog2.f32 %v473_v58  ;;  %v490_v0 = vmul.f32 -0.2, %v451_v60 }
 0x15b   : > { %v479_v63 = vmul.f32 0.3, %v453_v61  ;;  %v491_v1 = vmul.f32 -0.2, %v453_v61 }
 0x15c   : > { %v480_v2 = vmul.f32 1.442695, %v478_v62  ;;  %v492_v6 = vmul.f32 1.442695, %v490_v0 }
 0x15d   : > { %v482_v4 = vmul.f32 1.442695, %v479_v63  ;;  %v494_v8 = vmul.f32 1.442695, %v491_v1  ;;  %v510_v1 = vld [vmem:[#allocation2] sm:$0x3] }
 0x15e   : > { %882 = vpow2.f32 %v480_v2 }
 0x15f   : > { %v879_v3 = vpop.eup %878  ;;  %884 = vpow2.f32 %v482_v4 }
 0x160   : > { %v881_v5 = vpop.eup %880  ;;  %v475_v7 = vmul.f32 0.6931472, %v879_v3  ;;  %886 = vpow2.f32 %v492_v6 }
 0x161   : > { %v477_v9 = vmul.f32 0.6931472, %v881_v5  ;;  %888 = vpow2.f32 %v494_v8 }
 0x162   : > { %v484_v10 = vmul.f32 0.3, %v475_v7  ;;  %v496_v12 = vmul.f32 -0.2, %v475_v7 }
 0x163   : > { %v485_v14 = vmul.f32 0.3, %v477_v9  ;;  %v497_v15 = vmul.f32 -0.2, %v477_v9  ;;  %v539_v9 = vld [vmem:[#allocation3] sm:$0x3] }
 0x164   : > { %v486_v16 = vmul.f32 1.442695, %v484_v10  ;;  %v498_v18 = vmul.f32 1.442695, %v496_v12  ;;  %v883_v25 = vpop.eup %882 }
 0x165   : > { %v488_v19 = vmul.f32 1.442695, %v485_v14  ;;  %v500_v20 = vmul.f32 1.442695, %v497_v15  ;;  %v885_v26 = vpop.eup %884 }
 0x166   : > { %890 = vpow2.f32 %v486_v16  ;;  %v887_v27 = vpop.eup %886 }
 0x167   : > { %892 = vpow2.f32 %v488_v19  ;;  %v889_v29 = vpop.eup %888  ;;  %v504_v36 = vmul.f32 %v887_v27, %v1300_v17 }
 0x168   : > { %894 = vpow2.f32 %v498_v18  ;;  %v505_v39 = vmul.f32 %v889_v29, %v1305_v21 }
 0x169   : > { %896 = vpow2.f32 %v500_v20 }
 0x16c   : > { %v891_v30 = vpop.eup %890 }
 0x16d   : > { %v893_v31 = vpop.eup %892  ;;  %v502_v32 = vsub.f32 %v883_v25, %v891_v30 }
 0x16e   : > { %v895_v33 = vpop.eup %894  ;;  %v503_v34 = vsub.f32 %v885_v26, %v893_v31 }
 0x16f   : > { %v897_v35 = vpop.eup %896  ;;  %v506_v37 = vmul.f32 %v895_v33, %v1290_v11  ;;  %v511_v38 = vmul.f32 %v502_v32, %v502_v32 }
 0x170   : > { %v507_v40 = vmul.f32 %v897_v35, %v1295_v13  ;;  %v512_v41 = vmul.f32 %v503_v34, %v503_v34 }
 0x171   : > { %v508_v42 = vsub.f32 %v504_v36, %v506_v37  ;;  %v513_v43 = vsel %vm427_vm6, %v511_v38, 0.0 }
 0x172   : > { %v509_v44 = vsub.f32 %v505_v39, %v507_v40  ;;  %v514_v45 = vsel %vm427_vm6, %v512_v41, 0.0  ;;  %v515_v46 = vrot.slane %v513_v43, 4 }
 0x173   : > { %v521_v47 = vrot.slane %v514_v45, 4  ;;  %v540_v48 = vmul.f32 %v508_v42, %v508_v42 }
 0x174   : > { %v516_v49 = vadd.f32 %v515_v46, %v513_v43  ;;  %v541_v50 = vmul.f32 %v509_v44, %v509_v44 }
 0x175   : > { %v522_v17 = vadd.f32 %v521_v47, %v514_v45  ;;  %v542_v11 = vsel %vm427_vm6, %v540_v48, 0.0 }
 0x176   : > { %v517_v51 = vrot.slane %v516_v49, 2  ;;  %v543_v21 = vsel %vm427_vm6, %v541_v50, 0.0  ;;  %v544_v52 = vrot.slane %v542_v11, 4 }
 0x177   : > { %v523_v13 = vrot.slane %v522_v17, 2  ;;  %v550_v53 = vrot.slane %v543_v21, 4 }
 0x178   : > { %v518_v54 = vadd.f32 %v517_v51, %v516_v49  ;;  %v545_v55 = vadd.f32 %v544_v52, %v542_v11 }
 0x179   : > { %v524_v56 = vadd.f32 %v523_v13, %v522_v17  ;;  %v551_v57 = vadd.f32 %v550_v53, %v543_v21 }
 0x17a   : > { %v546_v58 = vrot.slane %v545_v55, 2  ;;  %v519_v59 = vrot.slane %v518_v54, 1 }
 0x17b   : > { %v525_v60 = vrot.slane %v524_v56, 1  ;;  %v552_v61 = vrot.slane %v551_v57, 2 }
 0x17c   : > { %v547_v62 = vadd.f32 %v546_v58, %v545_v55  ;;  %v520_v2 = vadd.f32 %v519_v59, %v518_v54 }
 0x17d   : > { %v526_v63 = vadd.f32 %v525_v60, %v524_v56  ;;  %v553_v0 = vadd.f32 %v552_v61, %v551_v57 }
 0x17e   : > { %v548_v4 = vrot.slane %v547_v62, 1 }
 0x17f   : > { %v529_v3 = vrot.slane %v526_v63, 7  ;;  %v554_v5 = vrot.slane %v553_v0, 1 }
 0x180   : > { %v549_v10 = vadd.f32 %v548_v4, %v547_v62 }
 0x181   : > { %v531_v6 = vsel %vm530_vm7, %v520_v2, %v529_v3  ;;  %v555_v7 = vadd.f32 %v554_v5, %v553_v0 }
 0x182   : > { %v533_v8 = vadd.f32 %v531_v6, %v510_v1 }
 0x183   : > { %v558_v12 = vrot.slane %v555_v7, 7 }
 0x184   : > { %538 = vst.msk [vmem:[#allocation2] sm:$0x3] %vm536_vm8, %v533_v8  ;;  %566 = sbr.rel (%p755_p11) target bundleno = 593 (0x251), region = 52 }
 0x185   : > { %v559_v14 = vsel %vm530_vm7, %v549_v10, %v558_v12 }
 0x186   : > { %v561_v15 = vadd.f32 %v559_v14, %v539_v9 }
 0x188   : > { %562 = vst.msk [vmem:[#allocation3] sm:$0x3] %vm536_vm8, %v561_v15 }
 0x18b   : > { %v567_v16 = vld [vmem:[#allocation2] sm:$0x3] }
 0x18c   : > { %v569_v19 = vperm.slane %v567_v16, 0  ;;  %v570_v20 = vperm.slane %v567_v16, 1 }
 0x18e   : > { %v573_v23 = vsel %vm530_vm7, %v569_v19, 0.0  ;;  %v574_v22 = vsel %vm530_vm7, %v570_v20, 0.0 }
 0x18f   : > { %v586_v18 = vld [vmem:[#allocation3] sm:$0x3]  ;;  %v575_v26 = vadd.f32 %v574_v22, %v573_v23 }
 0x190   : > { %v588_v24 = vperm.slane %v586_v18, 0  ;;  %v589_v25 = vperm.slane %v586_v18, 1 }
 0x191   : > { %576 = vadd.xlane.f32.xlu0 %v575_v26 }
 0x192   : > { %v592_v27 = vsel %vm530_vm7, %v588_v24, 0.0  ;;  %v593_v28 = vsel %vm530_vm7, %v589_v25, 0.0 }
 0x193   : > { %v594_v29 = vadd.f32 %v593_v28, %v592_v27 }
 0x199   : > { %595 = vadd.xlane.f32.xlu0 %v594_v29 }
 0x204   : > { %v577_v30 = vpop.xlane.xlu0 %576 }
 0x205   : > { %v578_v31 = vrot.slane %v577_v30, 4 }
 0x207   : > { %v579_v32 = vadd.f32 %v578_v31, %v577_v30 }
 0x209   : > { %v580_v33 = vrot.slane %v579_v32, 2 }
 0x20b   : > { %v581_v34 = vadd.f32 %v580_v33, %v579_v32 }
 0x20c   : > { %v596_v35 = vpop.xlane.xlu0 %595 }
 0x20d   : > { %v597_v36 = vrot.slane %v596_v35, 4  ;;  %v582_v37 = vrot.slane %v581_v34, 1 }
 0x20f   : > { %v598_v38 = vadd.f32 %v597_v36, %v596_v35  ;;  %v583_v39 = vadd.f32 %v582_v37, %v581_v34 }
 0x211   : > { %v599_v40 = vrot.slane %v598_v38, 2  ;;  %760 = vpush %v583_v39 }
 0x213   : > { %v600_v41 = vadd.f32 %v599_v40, %v598_v38 }
 0x215   : > { %v601_v42 = vrot.slane %v600_v41, 1 }
 0x217   : > { %v602_v43 = vadd.f32 %v601_v42, %v600_v41 }
 0x219   : > { %762 = vpush %v602_v43 }
 0x242   : > { %s761_s21 = spop %760 }
 0x243   : > { %s585_s28 = smul.f32 0.000114889706, %s761_s21 }
 0x24a   : > { %s763_s30 = spop %762 }
 0x24b   : > { %s604_s14 = smul.f32 0.000114889706, %s763_s30 }
 0x24d   : > { %s605_s23 = sadd.f32 %s604_s14, %s585_s28 }
 0x24f   : > { %v606_v44 = vstv %s605_s23 }
 0x250   : > { %608 = vst [vmem:[%s1262_s12] sm:$0x1] %v606_v44 }
 0x251 PF: > { %s618_s9 = scalar_lea.hbm %s1411_s4, %s1072_s22  ;;  %s620_s10 = sshll.u32 %s1262_s12, 4  ;;  %s621_s10 = int_to_ptr.vmem [resolvable:$true] %s620_s10 }
 0x252   : > { %s622_s27 = sshll.u32 %s618_s9, 4  ;;  %s610_s6 = scalar_lea.sflag [#allocation6], %s322_s20  ;;  %s623_s27 = int_to_ptr.hbm [resolvable:$true] %s622_s27 }
 0x253   : > { %s972_s29 = sshra.s32 %s623_s27, 4  ;;  %s978_s5 = scalar_lea.hbm %s1411_s4, 2  ;;  %s973_s29 = int_to_ptr.hbm [resolvable:$true] %s972_s29 }
 0x254   : > { %s974_s11 = scalar_lea.hbm %s973_s29, 1  ;;  %p979_p2 = scmp.lt.s32.totalorder %s973_s29, %s1411_s4 }
 0x255   : > { %p975_p12 = scmp.ne.s32.totalorder %s973_s29, %s974_s11  ;;  %p980_p4 = scmp.lt.s32.totalorder %s978_s5, %s974_s11 }
 0x257   : > { %p976_p0 = pnand %p975_p12, %p1207_p13  ;;  %p981_p6 = por %p980_p4, %p979_p2 }
 0x259   : > { %p977_p1 = pneg %p976_p0 }
 0x25b   : > { %p982_p7 = pnand %p981_p6, %p977_p1 }
 0x25d   : > { %985 = shalt.err (!%p982_p7)
}
 0x25e   : > { %768 = dma.vmem_to_hbm [thread:$0]  (%p1207_p13), %s621_s10, 16, %s623_s27, %s610_s6  }
 0x25f PF: > { %p782_p9 = scmp.ge.s32.totalorder %s1084_s25, 2  ;;  %s634_s22 = sand.u32 1, %s1044_s15  }
 0x260   : > { %s635_s20 = scalar_lea.sflag [#allocation6], %s634_s22 }
 0x261   : > { %p778_p10 = pnand %p782_p9, %p1220_p3 }
 0x263   : > { %p779_p5 = pneg %p778_p10 }
 0x265   : > { %1039 = dma.done.wait (%p779_p5), %s635_s20, 16  }
 0x266   : > { %1041 = vsyncadd (%p779_p5), %s635_s20, 4294967280  ;;  %s23_s25 = sadd.s32 1, %s1084_s25   ;;  %s1434_s12 = sld [smem:[#allocation18_spill]] }
 0x267   : > { %p20_p8 = scmp.ge.s32.totalorder %s23_s25, 8   ;;  %s1435_s28 = sld [smem:[#allocation13_spill]] }
 0x268   : > { %s1436_s20 = sld [smem:[#allocation19_spill]]  ;;  %s1441_s15 = smov %s1048_s16 }
 0x269   : > { %s1437_s21 = sld [smem:[#allocation14_spill]]  ;;  %s1442_s16 = smov %s1052_s17 }
 0x26a   : > { %s1438_s22 = sld [smem:[#allocation15_spill]]  ;;  %s1444_s18 = smov %s1060_s19 }
 0x26b   : > { %s1439_s23 = sld [smem:[#allocation16_spill]]  ;;  %22 = sbr.rel (!%p20_p8) target bundleno = 13 (0xd), region = 105 }
 0x26c   : > { %s1440_s24 = sld [smem:[#allocation17_spill]]  ;;  %s1443_s17 = smov %s1434_s12 }
 0x26d   : > { %s1445_s19 = smov %s1435_s28 }
 0x270   :  { %640 = vsyncpa [#allocation5], 1 }
 0x271   :  { %642 = vsyncpa [#allocation5 + $0x1], 1 }
 0x272   :  { %643 = vsyncpa [#allocation8], 1 }
 0x273   :  { %645 = vsyncpa [#allocation8 + $0x1], 1 }
 0x274   :  { %646 = vsyncpa [#allocation6], 1 }
 0x275   :  { %648 = vsyncpa [#allocation6 + $0x1], 1 }

</bundles_post_ra>
